<compile_context>
chip_gen: v6e
topology: v6e:2x2x1
jax: 0.10.0
libtpu: 0.0.40
codegen_flags: <defaults>
</compile_context>

<pallas_src>
import jax
import jax.numpy as jnp
from jax.experimental import pallas as pl
from jax.experimental.pallas import tpu as pltpu


# ---------------------------------------------------------------------------
# Kernels
# ---------------------------------------------------------------------------

def _load_compute(x_ref):
    """Load the block in its compute dtype (keep f32/bf16 native, promote the rest)."""
    x = x_ref[...]
    if x.dtype == jnp.float32 or x.dtype == jnp.bfloat16:
        return x
    return x.astype(jnp.float32)


def _blur_kernel_nchw(x_ref, o_ref):
    """NCHW path. Squeezed block = (TC, H, W): sublane = H, lane = W (W % 128 == 0)."""
    TC, H, W = x_ref.shape
    x = _load_compute(x_ref)

    # ---- vertical 1-2-1 over H (sublane axis): two XLU sublane rotates.
    # Reflect boundaries are fixed on the neighbour SUM, so the result is independent
    # of the rotate direction convention.
    up = pltpu.roll(x, shift=1, axis=1)
    dn = pltpu.roll(x, shift=H - 1, axis=1)
    sv = up + dn
    row = jax.lax.broadcasted_iota(jnp.int32, (TC, H, W), 1)
    e0 = x[:, 1:2, :]               # reflect: row -1 -> row 1
    e1 = x[:, H - 2:H - 1, :]       # reflect: row H  -> row H-2
    sv = jnp.where(row == 0, e0 + e0, sv)
    sv = jnp.where(row == H - 1, e1 + e1, sv)
    r = sv + (x + x)

    # ---- horizontal 1-2-1 over W (lane axis): two XLU lane rotates (W 128-aligned).
    lt = pltpu.roll(r, shift=1, axis=2)
    rt = pltpu.roll(r, shift=W - 1, axis=2)
    sh = lt + rt
    col = jax.lax.broadcasted_iota(jnp.int32, (TC, H, W), 2)
    c0 = r[:, :, 1:2]               # reflect: col -1 -> col 1
    c1 = r[:, :, W - 2:W - 1]       # reflect: col W  -> col W-2
    sh = jnp.where(col == 0, c0 + c0, sh)
    sh = jnp.where(col == W - 1, c1 + c1, sh)

    o_ref[...] = ((sh + (r + r)) * (1.0 / 16.0)).astype(o_ref.dtype)


def _blur_kernel_nhwc(x_ref, o_ref):
    """NHWC path. Squeezed block = (H, W, TC): H major, W sublane, C lane."""
    H, W, TC = x_ref.shape
    x = _load_compute(x_ref)

    # ---- vertical over H (major axis): reflect neighbours assembled by a major-dim
    # concat of slices -- pure vreg reordering, no lane/sublane data movement.
    up = jnp.concatenate([x[1:2], x[:H - 1]], axis=0)         # up[h] = x[h-1], up[0] = x[1]
    dn = jnp.concatenate([x[1:H], x[H - 2:H - 1]], axis=0)    # dn[h] = x[h+1], dn[-1] = x[H-2]
    r = (up + dn) + (x + x)

    # ---- horizontal over W (sublane axis): XLU sublane rotates + reflect fixups on the sum.
    lt = pltpu.roll(r, shift=1, axis=1)
    rt = pltpu.roll(r, shift=W - 1, axis=1)
    sh = lt + rt
    col = jax.lax.broadcasted_iota(jnp.int32, (H, W, TC), 1)
    c0 = r[:, 1:2, :]
    c1 = r[:, W - 2:W - 1, :]
    sh = jnp.where(col == 0, c0 + c0, sh)
    sh = jnp.where(col == W - 1, c1 + c1, sh)

    o_ref[...] = ((sh + (r + r)) * (1.0 / 16.0)).astype(o_ref.dtype)


# ---------------------------------------------------------------------------
# Wrapper
# ---------------------------------------------------------------------------

def _physical_vmem_bytes():
    try:
        info = pltpu.get_tpu_info()
        v = getattr(info, "vmem_capacity_bytes", None)
        if v:
            return int(v)
    except Exception:
        pass
    return 64 * 1024 * 1024  # conservative default = v7x per-TensorCore VMEM


def _pick_channel_block(C, plane_bytes, target_bytes, channels_on_lanes):
    """Channels per block, targeting ~target_bytes I/O per block."""
    max_tc = max(1, min(C, target_bytes // max(plane_bytes, 1)))
    if channels_on_lanes:
        # Channel block is one of the last-two block dims (lanes): must be C itself or a
        # 128-multiple divisor of C to satisfy the (8,128) block constraint.
        if C % 128 != 0 or max_tc < 128:
            return C
        tc = (max_tc // 128) * 128
        while C % tc != 0:
            tc -= 128
        return tc
    # Channel block is a major dim: any divisor of C works.
    tc = 1
    for d in range(1, C + 1):
        if C % d == 0 and d <= max_tc:
            tc = d
    return tc


def blur(x):
    """x: (N, C, H, W). Normalized 3x3 binomial blur with reflect padding, same shape/dtype."""
    N, C, H, W = x.shape
    assert H >= 2 and W >= 2, "reflect padding requires H, W >= 2"

    itemsize = x.dtype.itemsize
    phys_vmem = _physical_vmem_bytes()
    target_blk = max(1 << 20, phys_vmem // 16)   # ~4 MiB on v7x, ~8 MiB on v5e/v6e
    plane_bytes = H * W * itemsize

    use_nchw = (W % 128 == 0)   # lane-dense, no layout transposes: the path that matters for perf

    if use_nchw:
        tc = _pick_channel_block(C, plane_bytes, target_blk, channels_on_lanes=False)
        xin = x
        blk = (None, tc, H, W)
        index_map = lambda n, c: (n, c, 0, 0)
        kernel = _blur_kernel_nchw
        out_shape = jax.ShapeDtypeStruct((N, C, H, W), x.dtype)
    else:
        # Small / odd W: channels-last so both stencil axes avoid the lane dim entirely.
        tc = _pick_channel_block(C, plane_bytes, target_blk, channels_on_lanes=True)
        xin = jnp.transpose(x, (0, 2, 3, 1))     # tiny tensors in this regime
        blk = (None, H, W, tc)
        index_map = lambda n, c: (n, 0, 0, c)
        kernel = _blur_kernel_nhwc
        out_shape = jax.ShapeDtypeStruct((N, H, W, C), x.dtype)

    grid = (N, C // tc)
    blk_elems = tc * H * W
    blk_bytes = blk_elems * itemsize
    vmem_limit = int(min(phys_vmem * 3 // 4,
                         max(32 * 1024 * 1024, 4 * blk_bytes + 8 * blk_elems * 4)))

    y = pl.pallas_call(
        kernel,
        out_shape=out_shape,
        grid_spec=pltpu.PrefetchScalarGridSpec(
            num_scalar_prefetch=0,
            grid=grid,
            in_specs=[pl.BlockSpec(blk, index_map)],
            out_specs=pl.BlockSpec(blk, index_map),
        ),
        compiler_params=pltpu.CompilerParams(
            dimension_semantics=("parallel", "parallel"),
            vmem_limit_bytes=vmem_limit,
        ),
        cost_estimate=pl.CostEstimate(
            flops=7 * N * C * H * W,
            transcendentals=0,
            bytes_accessed=2 * N * C * H * W * itemsize,
        ),
    )(xin)

    if not use_nchw:
        y = jnp.transpose(y, (0, 3, 1, 2))
    return y


# ---------------------------------------------------------------------------
# Pure-JAX reference + self-check
# ---------------------------------------------------------------------------

def _blur_ref(x):
    """Reflect pad + normalized [1,2,1]x[1,2,1] depthwise conv (matches kornia.filter2d)."""
    xp = jnp.pad(x, ((0, 0), (0, 0), (1, 1), (1, 1)), mode="reflect").astype(jnp.float32)
    f = jnp.array([1.0, 2.0, 1.0])
    k = (f[:, None] * f[None, :]) / 16.0
    H, W = x.shape[2], x.shape[3]
    out = jnp.zeros(x.shape, jnp.float32)
    for di in range(3):
        for dj in range(3):
            out = out + k[di, dj] * xp[:, :, di:di + H, dj:dj + W]
    return out.astype(x.dtype)


if __name__ == "__main__":
    key = jax.random.PRNGKey(0)
    x = jax.random.normal(key, (2, 4, 16, 16), dtype=jnp.float32)

    y = blur(x)
    jax.block_until_ready(y)

    y_ref = _blur_ref(x)
    assert y.shape == x.shape and y.dtype == x.dtype
    assert jnp.allclose(y, y_ref, atol=1e-5, rtol=1e-5)

    print("KERNEL_OK")
</pallas_src>

<mosaic_0001>
module attributes {stable_mosaic.version = 11 : i64} {
  func.func @_blur_kernel_nhwc(%arg0: i32, %arg1: i32, %arg2: memref<1x16x16x4xf32, #tpu.memory_space<vmem>>, %arg3: memref<1x16x16x4xf32, #tpu.memory_space<vmem>>) attributes {dimension_semantics = [#tpu.dimension_semantics<parallel>, #tpu.dimension_semantics<parallel>], iteration_bounds = array<i64: 2, 1>, scalar_prefetch = 0 : i64, scratch_operands = 0 : i64, tpu.core_type = #tpu.core_type<tc>, window_params = [{transform_indices = @transform_0, window_bounds = array<i64: 1, 16, 16, 4>}, {transform_indices = @transform_1, window_bounds = array<i64: 1, 16, 16, 4>}]} {
    %c0 = arith.constant 0 : index
    %c0_0 = arith.constant 0 : index
    %c0_1 = arith.constant 0 : index
    %c0_2 = arith.constant 0 : index
    %0 = vector.load %arg2[%c0, %c0_0, %c0_1, %c0_2] : memref<1x16x16x4xf32, #tpu.memory_space<vmem>>, vector<1x16x16x4xf32>
    %1 = vector.shape_cast %0 : vector<1x16x16x4xf32> to vector<16x16x4xf32>
    %2 = vector.extract_strided_slice %1 {offsets = [1, 0, 0], sizes = [1, 16, 4], strides = [1, 1, 1]} : vector<16x16x4xf32> to vector<1x16x4xf32>
    %3 = vector.extract_strided_slice %1 {offsets = [0, 0, 0], sizes = [15, 16, 4], strides = [1, 1, 1]} : vector<16x16x4xf32> to vector<15x16x4xf32>
    %4 = tpu.concatenate %2, %3 in 0 : vector<1x16x4xf32>, vector<15x16x4xf32> -> vector<16x16x4xf32>
    %5 = vector.extract_strided_slice %1 {offsets = [1, 0, 0], sizes = [15, 16, 4], strides = [1, 1, 1]} : vector<16x16x4xf32> to vector<15x16x4xf32>
    %6 = vector.extract_strided_slice %1 {offsets = [14, 0, 0], sizes = [1, 16, 4], strides = [1, 1, 1]} : vector<16x16x4xf32> to vector<1x16x4xf32>
    %7 = tpu.concatenate %5, %6 in 0 : vector<15x16x4xf32>, vector<1x16x4xf32> -> vector<16x16x4xf32>
    %8 = arith.addf %4, %7 : vector<16x16x4xf32>
    %9 = arith.addf %1, %1 : vector<16x16x4xf32>
    %10 = arith.addf %8, %9 : vector<16x16x4xf32>
    %c1_i32 = arith.constant 1 : i32
    %11 = tpu.dynamic_rotate %10 by %c1_i32 dim 1 : vector<16x16x4xf32>, i32 -> vector<16x16x4xf32>
    %c15_i32 = arith.constant 15 : i32
    %12 = tpu.dynamic_rotate %10 by %c15_i32 dim 1 : vector<16x16x4xf32>, i32 -> vector<16x16x4xf32>
    %13 = arith.addf %11, %12 : vector<16x16x4xf32>
    %14 = tpu.iota {dimensions = array<i32: 1>} : vector<16x16x4xi32>
    %15 = vector.extract_strided_slice %10 {offsets = [0, 1, 0], sizes = [16, 1, 4], strides = [1, 1, 1]} : vector<16x16x4xf32> to vector<16x1x4xf32>
    %16 = vector.extract_strided_slice %10 {offsets = [0, 14, 0], sizes = [16, 1, 4], strides = [1, 1, 1]} : vector<16x16x4xf32> to vector<16x1x4xf32>
    %c0_i32 = arith.constant 0 : i32
    %17 = vector.broadcast %c0_i32 : i32 to vector<16x16x4xi32>
    %18 = arith.cmpi eq, %14, %17 : vector<16x16x4xi32>
    %19 = arith.addf %15, %15 : vector<16x1x4xf32>
    %20 = vector.shape_cast %19 : vector<16x1x4xf32> to vector<16x1x4xf32>
    %21 = vector.broadcast %20 : vector<16x1x4xf32> to vector<16x16x4xf32>
    %22 = arith.select %18, %21, %13 : vector<16x16x4xi1>, vector<16x16x4xf32>
    %c15_i32_3 = arith.constant 15 : i32
    %23 = vector.broadcast %c15_i32_3 : i32 to vector<16x16x4xi32>
    %24 = arith.cmpi eq, %14, %23 : vector<16x16x4xi32>
    %25 = arith.addf %16, %16 : vector<16x1x4xf32>
    %26 = vector.shape_cast %25 : vector<16x1x4xf32> to vector<16x1x4xf32>
    %27 = vector.broadcast %26 : vector<16x1x4xf32> to vector<16x16x4xf32>
    %28 = arith.select %24, %27, %22 : vector<16x16x4xi1>, vector<16x16x4xf32>
    %29 = arith.addf %10, %10 : vector<16x16x4xf32>
    %30 = arith.addf %28, %29 : vector<16x16x4xf32>
    %cst = arith.constant 6.250000e-02 : f32
    %31 = vector.broadcast %cst : f32 to vector<16x16x4xf32>
    %32 = arith.mulf %30, %31 : vector<16x16x4xf32>
    %c0_4 = arith.constant 0 : index
    %c0_5 = arith.constant 0 : index
    %c0_6 = arith.constant 0 : index
    %c0_7 = arith.constant 0 : index
    %33 = vector.load %arg3[%c0_4, %c0_5, %c0_6, %c0_7] : memref<1x16x16x4xf32, #tpu.memory_space<vmem>>, vector<1x16x16x4xf32>
    %34 = vector.shape_cast %33 : vector<1x16x16x4xf32> to vector<16x16x4xf32>
    %35 = vector.shape_cast %32 : vector<16x16x4xf32> to vector<1x16x16x4xf32>
    tpu.vector_store %arg3[%c0_4, %c0_5, %c0_6, %c0_7], %35 {strides = array<i32>} : memref<1x16x16x4xf32, #tpu.memory_space<vmem>>, vector<1x16x16x4xf32>,
    return
  }
  func.func @transform_0(%arg0: i32, %arg1: i32) -> (i32, i32, i32, i32) {
    %c0_i32 = arith.constant 0 : i32
    %c0_i32_0 = arith.constant 0 : i32
    %c0_i32_1 = arith.constant 0 : i32
    return %arg0, %c0_i32, %c0_i32_0, %arg1 : i32, i32, i32, i32
  }
  func.func @transform_1(%arg0: i32, %arg1: i32) -> (i32, i32, i32, i32) {
    %c0_i32 = arith.constant 0 : i32
    %c0_i32_0 = arith.constant 0 : i32
    %c0_i32_1 = arith.constant 0 : i32
    return %arg0, %c0_i32, %c0_i32_0, %arg1 : i32, i32, i32, i32
  }
}

</mosaic_0001>

<bundles_post_ra>
// kernel: tpu_custom_call.1
= control target key start
LH: loop header
LB: loop body
LE: loop exit
PB: predicated region body
PF: predicated region fallthrough
CT: control target
= control target key end

     0   :  { %s916_s6 = smov 0   ;;  %s918_s7 = smov 0   ;;  %s1423_s0 = inlined_call_operand.vmem [shape: f32[2,16,16,4], index: 0, kind: input, shape index: {}]   ;;  %s1424_s1 = inlined_call_operand.vmem [shape: f32[2,16,16,4], index: 1, kind: output, shape index: {}]  }
   0x1   :  { %s920_s8 = smov 0  }
   0x2 LB: > { %s23_s9 = sadd.s32 1, %s900_s7  ;;  %p849_p0 = scmp.ge.s32.totalorder %s904_s8, 1  ;;  %s904_s8 = sphi %s920_s8, %s11_s8   ;;  %s900_s7 = sphi %s918_s7, %s1426_s7   ;;  %s896_s6 = sphi %s916_s6, %s1425_s6  }
   0x3   : > { %p25_p1 = scmp.ge.s32.totalorder %s23_s9, 2  ;;  %p106_p2 = scmp.lt.s32.totalorder %s904_s8, 3 }
   0x5   : > { %s1428_s9 = smov (%p25_p1, %s23_s9), 0  ;;  %p107_p3 = pnand %p849_p0, %p106_p2 }
   0x6   : > { %p132_p4 = scmp.lt.s32.totalorder (!%p107_p3), %s896_s6, 1 }
   0x7   : > { %110 = sbr.rel (%p107_p3) target bundleno = 127 (0x7f), region = 24 }
   0xc   : > { %v304_v0 = vlaneseq  ;;  %s1430_s6 = smov (!%p132_p4, %s896_s6), 1  ;;  %vm729_vm4 = vcmask 31744  }
   0xd   : > { %s856_s10 = sshll.u32 %s1430_s6, 8 }
   0xe   : > { %v936_v1 = vshrl.u32 %v304_v0, 7  ;;  %s944_s13 = scalar_lea.vmem %s1423_s0, %s856_s10  ;;  %s1012_s16 = scalar_lea.vmem %s1424_s1, %s856_s10 }
   0xf   : > { %v148_v3 = vld [vmem:[%s944_s13] sm:$0xff]  ;;  %v149_v4 = vld [vmem:[%s944_s13 + $0x8] sm:$0xff]  ;;  %v150_v5 = vld [vmem:[%s944_s13 + $0x10] sm:$0xff] }
  0x10   : > { %vm306_vm0 = vcmp.lt.s32.totalorder %v936_v1, 1  ;;  %vm371_vm1 = vcmp.lt.s32.totalorder %v936_v1, 7  ;;  %v949_v2 = vadd.s32 8, %v936_v1  ;;  %vm437_vm2 = vcmp.eq.s32.totalorder %v936_v1, 0  ;;  %v151_v8 = vld [vmem:[%s944_s13 + $0x18] sm:$0xff]  ;;  %v152_v12 = vld [vmem:[%s944_s13 + $0x20] sm:$0xff] }
  0x11   : > { %v956_v6 = vsub.s32 1, %v936_v1  ;;  %v959_v7 = vsub.s32 6, %v936_v1  ;;  %v180_v9 = vadd.f32 %v150_v5, %v150_v5  ;;  %v212_v10 = vadd.f32 %v148_v3, %v148_v3  ;;  %v965_v13 = vld [vmem:[%s944_s13 + $0x28] sm:$0xff]  ;;  %v969_v17 = vld [vmem:[%s944_s13 + $0x30] sm:$0xff]  ;;  %v972_v18 = vld [vmem:[%s944_s13 + $0x38] sm:$0xff] }
  0x12   : > { %v213_v11 = vadd.f32 %v149_v4, %v149_v4  ;;  %vm552_vm3 = vcmp.eq.s32.totalorder %v949_v2, 15  ;;  %v181_v14 = vadd.f32 %v151_v8, %v151_v8  ;;  %v182_v15 = vadd.f32 %v152_v12, %v148_v3  ;;  %v975_v20 = vld [vmem:[%s944_s13 + $0x40] sm:$0xff]  ;;  %v1015_v3 = vld [vmem:[%s944_s13 + $0x48] sm:$0xff] }
  0x13   : > { %v183_v16 = vadd.f32 %v965_v13, %v149_v4  ;;  %v214_v19 = vadd.f32 %v152_v12, %v152_v12  ;;  %v240_v21 = vadd.f32 %v212_v10, %v180_v9  ;;  %v184_v22 = vadd.f32 %v969_v17, %v150_v5 }
  0x14   : > { %v185_v23 = vadd.f32 %v972_v18, %v151_v8  ;;  %v215_v24 = vadd.f32 %v965_v13, %v965_v13  ;;  %v241_v25 = vadd.f32 %v213_v11, %v181_v14  ;;  %v242_v26 = vadd.f32 %v182_v15, %v180_v9 }
  0x15   : > { %v243_v27 = vadd.f32 %v183_v16, %v181_v14  ;;  %v982_v28 = vadd.f32 %v975_v20, %v152_v12  ;;  %v272_v29 = vrot.slane %v240_v21, 7  ;;  %v339_v30 = vrot.slane %v240_v21, 1 }
  0x16   : > { %v439_v31 = vadd.f32 %v240_v21, %v240_v21  ;;  %v244_v32 = vadd.f32 %v214_v19, %v184_v22  ;;  %v288_v33 = vrot.slane %v241_v25, 7  ;;  %v355_v34 = vrot.slane %v241_v25, 1 }
  0x17   : > { %v553_v35 = vadd.f32 %v241_v25, %v241_v25  ;;  %v273_v36 = vrot.slane %v242_v26, 7  ;;  %v289_v38 = vrot.slane %v243_v27, 7  ;;  %v340_v39 = vrot.slane %v242_v26, 1 }
  0x18   : > { %v458_v37 = vrot.slane %v439_v31, %v956_v6  ;;  %v356_v40 = vrot.slane %v243_v27, 1  ;;  %v323_v41 = vsel %vm306_vm0, %v288_v33, %v272_v29  ;;  %v372_v42 = vsel %vm371_vm1, %v339_v30, %v355_v34 }
  0x19   : > { %v307_v43 = vsel %vm306_vm0, %v272_v29, %v288_v33  ;;  %v388_v44 = vsel %vm371_vm1, %v355_v34, %v339_v30  ;;  %v404_v45 = vadd.f32 %v372_v42, %v323_v41  ;;  %v572_v47 = vrot.slane %v553_v35, %v959_v7 }
  0x1a   : > { %v405_v46 = vadd.f32 %v388_v44, %v307_v43  ;;  %v324_v48 = vsel %vm306_vm0, %v289_v38, %v273_v36  ;;  %v373_v49 = vsel %vm371_vm1, %v340_v39, %v356_v40  ;;  %v440_v50 = vadd.f32 %v242_v26, %v242_v26  ;;  %v1036_v26 = vld [vmem:[%s944_s13 + $0x50] sm:$0xff] }
  0x1b   : > { %v308_v51 = vsel %vm306_vm0, %v273_v36, %v289_v38  ;;  %v389_v52 = vsel %vm371_vm1, %v356_v40, %v340_v39  ;;  %v519_v53 = vsel %vm437_vm2, %v458_v37, %v404_v45  ;;  %v406_v55 = vadd.f32 %v373_v49, %v324_v48 }
  0x1c   : > { %v634_v54 = vsel %vm552_vm3, %v572_v47, %v405_v46  ;;  %v407_v56 = vadd.f32 %v389_v52, %v308_v51  ;;  %v665_v57 = vadd.f32 %v519_v53, %v439_v31  ;;  %v462_v59 = vrot.slane %v440_v50, %v956_v6 }
  0x1d   : > { %v666_v58 = vadd.f32 %v634_v54, %v553_v35  ;;  %v554_v60 = vadd.f32 %v243_v27, %v243_v27  ;;  %v245_v61 = vadd.f32 %v215_v24, %v185_v23  ;;  %v274_v62 = vrot.slane %v244_v32, 7  ;;  %v1039_v27 = vld [vmem:[%s944_s13 + $0x58] sm:$0xff] }
  0x1e   : > { %v341_v63 = vrot.slane %v244_v32, 1  ;;  %v441_v0 = vadd.f32 %v244_v32, %v244_v32  ;;  %v697_v4 = vmul.f32 0.0625, %v665_v57  ;;  %v521_v8 = vsel %vm437_vm2, %v462_v59, %v406_v55  ;;  %v160_v57 = vld [vmem:[%s944_s13 + $0x60] sm:$0xff] }
  0x1f   : > { %v698_v5 = vmul.f32 0.0625, %v666_v58  ;;  %v576_v9 = vrot.slane %v554_v60, %v959_v7  ;;  %v667_v10 = vadd.f32 %v521_v8, %v440_v50  ;;  %v290_v11 = vrot.slane %v245_v61, 7 }
  0x20   : > { %v357_v12 = vrot.slane %v245_v61, 1  ;;  %v466_v14 = vrot.slane %v441_v0, %v956_v6  ;;  %730 = vst.msk [vmem:[%s1012_s16] sm:$0xff] %vm729_vm4, %v697_v4  ;;  %v555_v16 = vadd.f32 %v245_v61, %v245_v61  ;;  %v187_v19 = vadd.f32 %v1015_v3, %v965_v13 }
  0x21   : > { %731 = vst.msk [vmem:[%s1012_s16 + $0x8] sm:$0xff] %vm729_vm4, %v698_v5  ;;  %v636_v15 = vsel %vm552_vm3, %v576_v9, %v407_v56  ;;  %v216_v21 = vadd.f32 %v969_v17, %v969_v17  ;;  %v699_v22 = vmul.f32 0.0625, %v667_v10  ;;  %v325_v24 = vsel %vm306_vm0, %v290_v11, %v274_v62 }
  0x22   : > { %v668_v23 = vadd.f32 %v636_v15, %v554_v60  ;;  %v374_v25 = vsel %vm371_vm1, %v341_v63, %v357_v12  ;;  %v309_v13 = vsel %vm306_vm0, %v274_v62, %v290_v11  ;;  %v390_v30 = vsel %vm371_vm1, %v357_v12, %v341_v63 }
  0x23   : > { %v408_v29 = vadd.f32 %v374_v25, %v325_v24  ;;  %v580_v31 = vrot.slane %v555_v16, %v959_v7  ;;  %732 = vst.msk [vmem:[%s1012_s16 + $0x10] sm:$0xff] %vm729_vm4, %v699_v22  ;;  %v409_v33 = vadd.f32 %v390_v30, %v309_v13  ;;  %v217_v34 = vadd.f32 %v972_v18, %v972_v18  ;;  %v1099_v24 = vld [vmem:[%s944_s13 + $0x78] sm:$0xff] }
  0x24   : > { %v700_v32 = vmul.f32 0.0625, %v668_v23  ;;  %v246_v35 = vadd.f32 %v216_v21, %v982_v28  ;;  %v188_v37 = vadd.f32 %v1036_v26, %v969_v17  ;;  %v189_v38 = vadd.f32 %v1039_v27, %v972_v18  ;;  %v1096_v23 = vld [vmem:[%s944_s13 + $0x70] sm:$0xff] }
  0x25   : > { %v523_v36 = vsel %vm437_vm2, %v466_v14, %v408_v29  ;;  %v218_v39 = vadd.f32 %v975_v20, %v975_v20  ;;  %v638_v41 = vsel %vm552_vm3, %v580_v31, %v409_v33  ;;  %v247_v28 = vadd.f32 %v217_v34, %v187_v19 }
  0x26   : > { %733 = vst.msk [vmem:[%s1012_s16 + $0x18] sm:$0xff] %vm729_vm4, %v700_v32  ;;  %v669_v40 = vadd.f32 %v523_v36, %v441_v0  ;;  %v275_v42 = vrot.slane %v246_v35, 7  ;;  %v670_v43 = vadd.f32 %v638_v41, %v555_v16  ;;  %v342_v44 = vrot.slane %v246_v35, 1  ;;  %v161_v16 = vld [vmem:[%s944_s13 + $0x68] sm:$0xff] }
  0x27   : > { %v442_v45 = vadd.f32 %v246_v35, %v246_v35  ;;  %v219_v17 = vadd.f32 %v1015_v3, %v1015_v3  ;;  %v291_v46 = vrot.slane %v247_v28, 7  ;;  %v358_v47 = vrot.slane %v247_v28, 1  ;;  %v1110_v35 = vld [vmem:[%s944_s13 + $0x80] sm:$0xff]  ;;  %v1113_v36 = vld [vmem:[%s944_s13 + $0x88] sm:$0xff] }
  0x28   : > { %v701_v18 = vmul.f32 0.0625, %v669_v40  ;;  %v556_v48 = vadd.f32 %v247_v28, %v247_v28  ;;  %v702_v49 = vmul.f32 0.0625, %v670_v43  ;;  %v248_v51 = vadd.f32 %v218_v39, %v188_v37 }
  0x29   : > { %v470_v50 = vrot.slane %v442_v45, %v956_v6  ;;  %v249_v52 = vadd.f32 %v219_v17, %v189_v38  ;;  %v326_v53 = vsel %vm306_vm0, %v291_v46, %v275_v42  ;;  %v375_v54 = vsel %vm371_vm1, %v342_v44, %v358_v47 }
  0x2a   : > { %734 = vst.msk [vmem:[%s1012_s16 + $0x20] sm:$0xff] %vm729_vm4, %v701_v18  ;;  %v310_v55 = vsel %vm306_vm0, %v275_v42, %v291_v46  ;;  %v391_v56 = vsel %vm371_vm1, %v358_v47, %v342_v44  ;;  %735 = vst.msk [vmem:[%s1012_s16 + $0x28] sm:$0xff] %vm729_vm4, %v702_v49  ;;  %v410_v58 = vadd.f32 %v375_v54, %v326_v53  ;;  %v276_v61 = vrot.slane %v248_v51, 7 }
  0x2b   : > { %v411_v59 = vadd.f32 %v391_v56, %v310_v55  ;;  %v584_v60 = vrot.slane %v556_v48, %v959_v7  ;;  %v292_v62 = vrot.slane %v249_v52, 7  ;;  %v343_v63 = vrot.slane %v248_v51, 1 }
  0x2c   : > { %v359_v0 = vrot.slane %v249_v52, 1  ;;  %v443_v4 = vadd.f32 %v248_v51, %v248_v51  ;;  %v525_v5 = vsel %vm437_vm2, %v470_v50, %v410_v58  ;;  %v557_v9 = vadd.f32 %v249_v52, %v249_v52 }
  0x2d   : > { %v640_v8 = vsel %vm552_vm3, %v584_v60, %v411_v59  ;;  %v190_v10 = vadd.f32 %v160_v57, %v975_v20  ;;  %v671_v11 = vadd.f32 %v525_v5, %v442_v45  ;;  %v327_v14 = vsel %vm306_vm0, %v292_v62, %v276_v61 }
  0x2e   : > { %v672_v12 = vadd.f32 %v640_v8, %v556_v48  ;;  %v376_v15 = vsel %vm371_vm1, %v343_v63, %v359_v0  ;;  %v474_v21 = vrot.slane %v443_v4, %v956_v6  ;;  %v311_v22 = vsel %vm306_vm0, %v276_v61, %v292_v62 }
  0x2f   : > { %v412_v19 = vadd.f32 %v376_v15, %v327_v14  ;;  %v392_v20 = vsel %vm371_vm1, %v359_v0, %v343_v63  ;;  %v703_v25 = vmul.f32 0.0625, %v671_v11  ;;  %v588_v30 = vrot.slane %v557_v9, %v959_v7 }
  0x30   : > { %v704_v29 = vmul.f32 0.0625, %v672_v12  ;;  %v413_v13 = vadd.f32 %v392_v20, %v311_v22  ;;  %v191_v32 = vadd.f32 %v161_v16, %v1015_v3  ;;  %v220_v33 = vadd.f32 %v1036_v26, %v1036_v26 }
  0x31   : > { %v527_v31 = vsel %vm437_vm2, %v474_v21, %v412_v19  ;;  %v221_v34 = vadd.f32 %v1039_v27, %v1039_v27  ;;  %736 = vst.msk [vmem:[%s1012_s16 + $0x30] sm:$0xff] %vm729_vm4, %v703_v25  ;;  %v192_v3 = vadd.f32 %v1096_v23, %v1036_v26  ;;  %v193_v39 = vadd.f32 %v1099_v24, %v1039_v27  ;;  %v1155_v19 = vld [vmem:[%s944_s13 + $0x90] sm:$0xff]  ;;  %v1158_v21 = vld [vmem:[%s944_s13 + $0x98] sm:$0xff] }
  0x32   : > { %737 = vst.msk [vmem:[%s1012_s16 + $0x38] sm:$0xff] %vm729_vm4, %v704_v29  ;;  %v673_v37 = vadd.f32 %v527_v31, %v443_v4  ;;  %v642_v38 = vsel %vm552_vm3, %v588_v30, %v413_v13  ;;  %v250_v41 = vadd.f32 %v220_v33, %v190_v10  ;;  %v222_v42 = vadd.f32 %v160_v57, %v160_v57 }
  0x33   : > { %v674_v40 = vadd.f32 %v642_v38, %v557_v9  ;;  %v251_v28 = vadd.f32 %v221_v34, %v191_v32  ;;  %v223_v44 = vadd.f32 %v161_v16, %v161_v16  ;;  %v194_v45 = vadd.f32 %v1110_v35, %v160_v57 }
  0x34   : > { %v705_v43 = vmul.f32 0.0625, %v673_v37  ;;  %v195_v17 = vadd.f32 %v1113_v36, %v161_v16  ;;  %v277_v46 = vrot.slane %v250_v41, 7  ;;  %v344_v48 = vrot.slane %v250_v41, 1 }
  0x35   : > { %v706_v18 = vmul.f32 0.0625, %v674_v40  ;;  %v293_v47 = vrot.slane %v251_v28, 7  ;;  %v360_v26 = vrot.slane %v251_v28, 1  ;;  %v444_v49 = vadd.f32 %v250_v41, %v250_v41 }
  0x36   : > { %738 = vst.msk [vmem:[%s1012_s16 + $0x40] sm:$0xff] %vm729_vm4, %v705_v43  ;;  %v558_v27 = vadd.f32 %v251_v28, %v251_v28  ;;  %v252_v50 = vadd.f32 %v222_v42, %v192_v3  ;;  %v253_v53 = vadd.f32 %v223_v44, %v193_v39  ;;  %v224_v54 = vadd.f32 %v1096_v23, %v1096_v23 }
  0x37   : > { %739 = vst.msk [vmem:[%s1012_s16 + $0x48] sm:$0xff] %vm729_vm4, %v706_v18  ;;  %v328_v51 = vsel %vm306_vm0, %v293_v47, %v277_v46  ;;  %v312_v52 = vsel %vm306_vm0, %v277_v46, %v293_v47  ;;  %v377_v55 = vsel %vm371_vm1, %v344_v48, %v360_v26  ;;  %v478_v56 = vrot.slane %v444_v49, %v956_v6  ;;  %v1182_v18 = vld [vmem:[%s944_s13 + $0xa0] sm:$0xff] }
  0x38   : > { %v393_v57 = vsel %vm371_vm1, %v360_v26, %v344_v48  ;;  %v592_v58 = vrot.slane %v558_v27, %v959_v7  ;;  %v414_v59 = vadd.f32 %v377_v55, %v328_v51  ;;  %v278_v61 = vrot.slane %v252_v50, 7 }
  0x39   : > { %v415_v60 = vadd.f32 %v393_v57, %v312_v52  ;;  %v294_v62 = vrot.slane %v253_v53, 7  ;;  %v345_v63 = vrot.slane %v252_v50, 1  ;;  %v361_v0 = vrot.slane %v253_v53, 1 }
  0x3a   : > { %v445_v4 = vadd.f32 %v252_v50, %v252_v50  ;;  %v559_v5 = vadd.f32 %v253_v53, %v253_v53  ;;  %v529_v8 = vsel %vm437_vm2, %v478_v56, %v414_v59  ;;  %v225_v29 = vadd.f32 %v1099_v24, %v1099_v24 }
  0x3b   : > { %v644_v9 = vsel %vm552_vm3, %v592_v58, %v415_v60  ;;  %v329_v10 = vsel %vm306_vm0, %v294_v62, %v278_v61  ;;  %v313_v11 = vsel %vm306_vm0, %v278_v61, %v294_v62  ;;  %v675_v12 = vadd.f32 %v529_v8, %v444_v49  ;;  %v1190_v49 = vld [vmem:[%s944_s13 + $0xa8] sm:$0xff] }
  0x3c   : > { %v676_v14 = vadd.f32 %v644_v9, %v558_v27  ;;  %v378_v15 = vsel %vm371_vm1, %v345_v63, %v361_v0  ;;  %v482_v16 = vrot.slane %v445_v4, %v956_v6  ;;  %v394_v20 = vsel %vm371_vm1, %v361_v0, %v345_v63 }
  0x3d   : > { %v416_v22 = vadd.f32 %v378_v15, %v329_v10  ;;  %v596_v25 = vrot.slane %v559_v5, %v959_v7  ;;  %v707_v13 = vmul.f32 0.0625, %v675_v12  ;;  %v417_v31 = vadd.f32 %v394_v20, %v313_v11  ;;  %v1218_v12 = vld [vmem:[%s944_s13 + $0xb0] sm:$0xff] }
  0x3e   : > { %v708_v30 = vmul.f32 0.0625, %v676_v14  ;;  %v254_v32 = vadd.f32 %v224_v54, %v194_v45  ;;  %v255_v34 = vadd.f32 %v225_v29, %v195_v17  ;;  %v196_v37 = vadd.f32 %v1155_v19, %v1096_v23  ;;  %v1221_v14 = vld [vmem:[%s944_s13 + $0xb8] sm:$0xff] }
  0x3f   : > { %v531_v33 = vsel %vm437_vm2, %v482_v16, %v416_v22  ;;  %v197_v38 = vadd.f32 %v1158_v21, %v1099_v24  ;;  %740 = vst.msk [vmem:[%s1012_s16 + $0x50] sm:$0xff] %vm729_vm4, %v707_v13  ;;  %v646_v39 = vsel %vm552_vm3, %v596_v25, %v417_v31  ;;  %v226_v24 = vadd.f32 %v1110_v35, %v1110_v35 }
  0x40   : > { %741 = vst.msk [vmem:[%s1012_s16 + $0x58] sm:$0xff] %vm729_vm4, %v708_v30  ;;  %v677_v3 = vadd.f32 %v531_v33, %v445_v4  ;;  %v279_v40 = vrot.slane %v254_v32, 7  ;;  %v346_v41 = vrot.slane %v254_v32, 1  ;;  %v678_v28 = vadd.f32 %v646_v39, %v559_v5 }
  0x41   : > { %v295_v42 = vrot.slane %v255_v34, 7  ;;  %v362_v43 = vrot.slane %v255_v34, 1  ;;  %v446_v23 = vadd.f32 %v254_v32, %v254_v32  ;;  %v560_v45 = vadd.f32 %v255_v34, %v255_v34 }
  0x42   : > { %v709_v44 = vmul.f32 0.0625, %v677_v3  ;;  %v227_v17 = vadd.f32 %v1113_v36, %v1113_v36  ;;  %v710_v46 = vmul.f32 0.0625, %v678_v28  ;;  %v256_v54 = vadd.f32 %v226_v24, %v196_v37 }
  0x43   : > { %v330_v47 = vsel %vm306_vm0, %v295_v42, %v279_v40  ;;  %v379_v48 = vsel %vm371_vm1, %v346_v41, %v362_v43  ;;  %v486_v26 = vrot.slane %v446_v23, %v956_v6  ;;  %v314_v50 = vsel %vm306_vm0, %v279_v40, %v295_v42 }
  0x44   : > { %742 = vst.msk [vmem:[%s1012_s16 + $0x60] sm:$0xff] %vm729_vm4, %v709_v44  ;;  %v418_v27 = vadd.f32 %v379_v48, %v330_v47  ;;  %v395_v51 = vsel %vm371_vm1, %v362_v43, %v346_v41  ;;  %v600_v52 = vrot.slane %v560_v45, %v959_v7  ;;  %743 = vst.msk [vmem:[%s1012_s16 + $0x68] sm:$0xff] %vm729_vm4, %v710_v46  ;;  %v280_v63 = vrot.slane %v256_v54, 7  ;;  %v172_v46 = vld [vmem:[%s944_s13 + $0xc0] sm:$0xff] }
  0x45   : > { %v419_v53 = vadd.f32 %v395_v51, %v314_v50  ;;  %v257_v55 = vadd.f32 %v227_v17, %v197_v38  ;;  %v198_v56 = vadd.f32 %v1182_v18, %v1110_v35  ;;  %v199_v58 = vadd.f32 %v1190_v49, %v1113_v36 }
  0x46   : > { %v533_v57 = vsel %vm437_vm2, %v486_v26, %v418_v27  ;;  %v228_v59 = vadd.f32 %v1155_v19, %v1155_v19  ;;  %v229_v60 = vadd.f32 %v1158_v21, %v1158_v21  ;;  %v347_v4 = vrot.slane %v256_v54, 1 }
  0x47   : > { %v679_v61 = vadd.f32 %v533_v57, %v446_v23  ;;  %v648_v62 = vsel %vm552_vm3, %v600_v52, %v419_v53  ;;  %v296_v35 = vrot.slane %v257_v55, 7  ;;  %v363_v5 = vrot.slane %v257_v55, 1 }
  0x48   : > { %v680_v0 = vadd.f32 %v648_v62, %v560_v45  ;;  %v447_v8 = vadd.f32 %v256_v54, %v256_v54  ;;  %v561_v11 = vadd.f32 %v257_v55, %v257_v55  ;;  %v258_v30 = vadd.f32 %v228_v59, %v198_v56  ;;  %v1261_v54 = vld [vmem:[%s944_s13 + $0xc8] sm:$0xff] }
  0x49   : > { %v711_v36 = vmul.f32 0.0625, %v679_v61  ;;  %v331_v9 = vsel %vm306_vm0, %v296_v35, %v280_v63  ;;  %v315_v10 = vsel %vm306_vm0, %v280_v63, %v296_v35  ;;  %v380_v16 = vsel %vm371_vm1, %v347_v4, %v363_v5 }
  0x4a   : > { %v712_v15 = vmul.f32 0.0625, %v680_v0  ;;  %v490_v22 = vrot.slane %v447_v8, %v956_v6  ;;  %v396_v20 = vsel %vm371_vm1, %v363_v5, %v347_v4  ;;  %v420_v25 = vadd.f32 %v380_v16, %v331_v9  ;;  %v1272_v5 = vld [vmem:[%s944_s13 + $0xd0] sm:$0xff] }
  0x4b   : > { %744 = vst.msk [vmem:[%s1012_s16 + $0x70] sm:$0xff] %vm729_vm4, %v711_v36  ;;  %v421_v29 = vadd.f32 %v396_v20, %v315_v10  ;;  %v604_v13 = vrot.slane %v561_v11, %v959_v7  ;;  %v259_v31 = vadd.f32 %v229_v60, %v199_v58  ;;  %v200_v32 = vadd.f32 %v1218_v12, %v1155_v19  ;;  %v1281_v10 = vld [vmem:[%s944_s13 + $0xd8] sm:$0xff] }
  0x4c   : > { %745 = vst.msk [vmem:[%s1012_s16 + $0x78] sm:$0xff] %vm729_vm4, %v712_v15  ;;  %v201_v33 = vadd.f32 %v1221_v14, %v1158_v21  ;;  %v230_v34 = vadd.f32 %v1182_v18, %v1182_v18  ;;  %v535_v37 = vsel %vm437_vm2, %v490_v22, %v420_v25  ;;  %v281_v3 = vrot.slane %v258_v30, 7 }
  0x4d   : > { %v650_v38 = vsel %vm552_vm3, %v604_v13, %v421_v29  ;;  %v348_v39 = vrot.slane %v258_v30, 1  ;;  %v681_v40 = vadd.f32 %v535_v37, %v447_v8  ;;  %v297_v28 = vrot.slane %v259_v31, 7  ;;  %v1295_v13 = vld [vmem:[%s944_s13 + $0xe0] sm:$0xff] }
  0x4e   : > { %v682_v41 = vadd.f32 %v650_v38, %v561_v11  ;;  %v364_v19 = vrot.slane %v259_v31, 1  ;;  %v448_v42 = vadd.f32 %v258_v30, %v258_v30  ;;  %v562_v21 = vadd.f32 %v259_v31, %v259_v31 }
  0x4f   : > { %v231_v43 = vadd.f32 %v1190_v49, %v1190_v49  ;;  %v260_v23 = vadd.f32 %v230_v34, %v200_v32  ;;  %v713_v44 = vmul.f32 0.0625, %v681_v40  ;;  %v332_v24 = vsel %vm306_vm0, %v297_v28, %v281_v3 }
  0x50   : > { %v714_v45 = vmul.f32 0.0625, %v682_v41  ;;  %v381_v17 = vsel %vm371_vm1, %v348_v39, %v364_v19  ;;  %v494_v48 = vrot.slane %v448_v42, %v956_v6  ;;  %v316_v26 = vsel %vm306_vm0, %v281_v3, %v297_v28 }
  0x51   : > { %v422_v47 = vadd.f32 %v381_v17, %v332_v24  ;;  %v397_v27 = vsel %vm371_vm1, %v364_v19, %v348_v39  ;;  %746 = vst.msk [vmem:[%s1012_s16 + $0x80] sm:$0xff] %vm729_vm4, %v713_v44  ;;  %v608_v51 = vrot.slane %v562_v21, %v959_v7  ;;  %v261_v52 = vadd.f32 %v231_v43, %v201_v33 }
  0x52   : > { %747 = vst.msk [vmem:[%s1012_s16 + $0x88] sm:$0xff] %vm729_vm4, %v714_v45  ;;  %v423_v50 = vadd.f32 %v397_v27, %v316_v26  ;;  %v282_v53 = vrot.slane %v260_v23, 7  ;;  %v349_v56 = vrot.slane %v260_v23, 1  ;;  %v449_v57 = vadd.f32 %v260_v23, %v260_v23 }
  0x53   : > { %v537_v55 = vsel %vm437_vm2, %v494_v48, %v422_v47  ;;  %v202_v58 = vadd.f32 %v172_v46, %v1182_v18  ;;  %v298_v61 = vrot.slane %v261_v52, 7  ;;  %v365_v62 = vrot.slane %v261_v52, 1 }
  0x54   : > { %v683_v59 = vadd.f32 %v537_v55, %v448_v42  ;;  %v652_v60 = vsel %vm552_vm3, %v608_v51, %v423_v50  ;;  %v498_v35 = vrot.slane %v449_v57, %v956_v6  ;;  %v563_v0 = vadd.f32 %v261_v52, %v261_v52  ;;  %v177_v50 = vld [vmem:[%s944_s13 + $0xe8] sm:$0xff] }
  0x55   : > { %v684_v63 = vadd.f32 %v652_v60, %v562_v21  ;;  %v203_v4 = vadd.f32 %v1261_v54, %v1190_v49  ;;  %v333_v18 = vsel %vm306_vm0, %v298_v61, %v282_v53  ;;  %v382_v36 = vsel %vm371_vm1, %v349_v56, %v365_v62 }
  0x56   : > { %v715_v8 = vmul.f32 0.0625, %v683_v59  ;;  %v317_v9 = vsel %vm306_vm0, %v282_v53, %v298_v61  ;;  %v424_v15 = vadd.f32 %v382_v36, %v333_v18  ;;  %v398_v49 = vsel %vm371_vm1, %v365_v62, %v349_v56  ;;  %v178_v18 = vld [vmem:[%s944_s13 + $0xf0] sm:$0xff]  ;;  %v179_v36 = vld [vmem:[%s944_s13 + $0xf8] sm:$0xff] }
  0x57   : > { %v716_v11 = vmul.f32 0.0625, %v684_v63  ;;  %v612_v16 = vrot.slane %v563_v0, %v959_v7  ;;  %v425_v22 = vadd.f32 %v398_v49, %v317_v9  ;;  %v232_v20 = vadd.f32 %v1218_v12, %v1218_v12 }
  0x58   : > { %748 = vst.msk [vmem:[%s1012_s16 + $0x90] sm:$0xff] %vm729_vm4, %v715_v8  ;;  %v233_v25 = vadd.f32 %v1221_v14, %v1221_v14  ;;  %v204_v29 = vadd.f32 %v1272_v5, %v1218_v12  ;;  %v539_v30 = vsel %vm437_vm2, %v498_v35, %v424_v15  ;;  %v205_v31 = vadd.f32 %v1281_v10, %v1221_v14 }
  0x59   : > { %749 = vst.msk [vmem:[%s1012_s16 + $0x98] sm:$0xff] %vm729_vm4, %v716_v11  ;;  %v234_v32 = vadd.f32 %v172_v46, %v172_v46  ;;  %v235_v33 = vadd.f32 %v1261_v54, %v1261_v54  ;;  %v685_v34 = vadd.f32 %v539_v30, %v449_v57  ;;  %v654_v37 = vsel %vm552_vm3, %v612_v16, %v425_v22 }
  0x5a   : > { %v262_v12 = vadd.f32 %v232_v20, %v202_v58  ;;  %v263_v38 = vadd.f32 %v233_v25, %v203_v4  ;;  %v686_v3 = vadd.f32 %v654_v37, %v563_v0  ;;  %v206_v41 = vadd.f32 %v1295_v13, %v172_v46 }
  0x5b   : > { %v264_v39 = vadd.f32 %v234_v32, %v204_v29  ;;  %v265_v40 = vadd.f32 %v235_v33, %v205_v31  ;;  %v717_v28 = vmul.f32 0.0625, %v685_v34  ;;  %v207_v62 = vadd.f32 %v177_v50, %v1261_v54 }
  0x5c   : > { %v283_v19 = vrot.slane %v262_v12, 7  ;;  %v299_v14 = vrot.slane %v263_v38, 7  ;;  %v350_v42 = vrot.slane %v262_v12, 1  ;;  %v718_v21 = vmul.f32 0.0625, %v686_v3 }
  0x5d   : > { %v366_v43 = vrot.slane %v263_v38, 1  ;;  %v450_v23 = vadd.f32 %v262_v12, %v262_v12  ;;  %v564_v44 = vadd.f32 %v263_v38, %v263_v38  ;;  %750 = vst.msk [vmem:[%s1012_s16 + $0xa0] sm:$0xff] %vm729_vm4, %v717_v28  ;;  %v284_v17 = vrot.slane %v264_v39, 7 }
  0x5e   : > { %v334_v45 = vsel %vm306_vm0, %v299_v14, %v283_v19  ;;  %v318_v24 = vsel %vm306_vm0, %v283_v19, %v299_v14  ;;  %v300_v47 = vrot.slane %v265_v40, 7  ;;  %751 = vst.msk [vmem:[%s1012_s16 + $0xa8] sm:$0xff] %vm729_vm4, %v718_v21  ;;  %v351_v55 = vrot.slane %v264_v39, 1 }
  0x5f   : > { %v383_v46 = vsel %vm371_vm1, %v350_v42, %v366_v43  ;;  %v502_v48 = vrot.slane %v450_v23, %v956_v6  ;;  %v399_v26 = vsel %vm371_vm1, %v366_v43, %v350_v42  ;;  %v616_v27 = vrot.slane %v564_v44, %v959_v7 }
  0x60   : > { %v426_v51 = vadd.f32 %v383_v46, %v334_v45  ;;  %v427_v52 = vadd.f32 %v399_v26, %v318_v24  ;;  %v335_v53 = vsel %vm306_vm0, %v300_v47, %v284_v17  ;;  %v367_v56 = vrot.slane %v265_v40, 1 }
  0x61   : > { %v451_v57 = vadd.f32 %v264_v39, %v264_v39  ;;  %v319_v58 = vsel %vm306_vm0, %v284_v17, %v300_v47  ;;  %v565_v59 = vadd.f32 %v265_v40, %v265_v40  ;;  %v236_v63 = vadd.f32 %v1272_v5, %v1272_v5 }
  0x62   : > { %v541_v60 = vsel %vm437_vm2, %v502_v48, %v426_v51  ;;  %v656_v61 = vsel %vm552_vm3, %v616_v27, %v427_v52  ;;  %v384_v4 = vsel %vm371_vm1, %v351_v55, %v367_v56  ;;  %v400_v11 = vsel %vm371_vm1, %v367_v56, %v351_v55 }
  0x63   : > { %v687_v35 = vadd.f32 %v541_v60, %v450_v23  ;;  %v688_v0 = vadd.f32 %v656_v61, %v564_v44  ;;  %v506_v8 = vrot.slane %v451_v57, %v956_v6  ;;  %v428_v9 = vadd.f32 %v384_v4, %v335_v53 }
  0x64   : > { %v620_v54 = vrot.slane %v565_v59, %v959_v7  ;;  %v237_v15 = vadd.f32 %v1281_v10, %v1281_v10  ;;  %v429_v22 = vadd.f32 %v400_v11, %v319_v58  ;;  %v266_v20 = vadd.f32 %v236_v63, %v206_v41 }
  0x65   : > { %v719_v49 = vmul.f32 0.0625, %v687_v35  ;;  %v720_v16 = vmul.f32 0.0625, %v688_v0  ;;  %v543_v25 = vsel %vm437_vm2, %v506_v8, %v428_v9  ;;  %v208_v30 = vadd.f32 %v178_v18, %v1272_v5 }
  0x66   : > { %v267_v29 = vadd.f32 %v237_v15, %v207_v62  ;;  %v209_v31 = vadd.f32 %v179_v36, %v1281_v10  ;;  %v689_v32 = vadd.f32 %v543_v25, %v451_v57  ;;  %v658_v33 = vsel %vm552_vm3, %v620_v54, %v429_v22 }
  0x67   : > { %752 = vst.msk [vmem:[%s1012_s16 + $0xb0] sm:$0xff] %vm729_vm4, %v719_v49  ;;  %753 = vst.msk [vmem:[%s1012_s16 + $0xb8] sm:$0xff] %vm729_vm4, %v720_v16  ;;  %v285_v34 = vrot.slane %v266_v20, 7  ;;  %v352_v37 = vrot.slane %v266_v20, 1  ;;  %v690_v12 = vadd.f32 %v658_v33, %v565_v59  ;;  %v452_v39 = vadd.f32 %v266_v20, %v266_v20 }
  0x68   : > { %v301_v38 = vrot.slane %v267_v29, 7  ;;  %v368_v3 = vrot.slane %v267_v29, 1  ;;  %v721_v40 = vmul.f32 0.0625, %v689_v32  ;;  %v566_v5 = vadd.f32 %v267_v29, %v267_v29 }
  0x69   : > { %v210_v10 = vadd.f32 %v1295_v13, %v1295_v13  ;;  %v211_v41 = vadd.f32 %v177_v50, %v177_v50  ;;  %v722_v28 = vmul.f32 0.0625, %v690_v12  ;;  %v510_v42 = vrot.slane %v452_v39, %v956_v6 }
  0x6a   : > { %v336_v19 = vsel %vm306_vm0, %v301_v38, %v285_v34  ;;  %v385_v14 = vsel %vm371_vm1, %v352_v37, %v368_v3  ;;  %754 = vst.msk [vmem:[%s1012_s16 + $0xc0] sm:$0xff] %vm729_vm4, %v721_v40  ;;  %v320_v43 = vsel %vm306_vm0, %v285_v34, %v301_v38  ;;  %v401_v23 = vsel %vm371_vm1, %v368_v3, %v352_v37 }
  0x6b   : > { %v430_v21 = vadd.f32 %v385_v14, %v336_v19  ;;  %v624_v13 = vrot.slane %v566_v5, %v959_v7  ;;  %755 = vst.msk [vmem:[%s1012_s16 + $0xc8] sm:$0xff] %vm729_vm4, %v722_v28  ;;  %v431_v44 = vadd.f32 %v401_v23, %v320_v43  ;;  %v268_v45 = vadd.f32 %v210_v10, %v208_v30 }
  0x6c   : > { %v269_v24 = vadd.f32 %v211_v41, %v209_v31  ;;  %v238_v47 = vadd.f32 %v178_v18, %v178_v18  ;;  %v239_v46 = vadd.f32 %v179_v36, %v179_v36 }
  0x6d   : > { %v545_v17 = vsel %vm437_vm2, %v510_v42, %v430_v21  ;;  %v660_v26 = vsel %vm552_vm3, %v624_v13, %v431_v44  ;;  %v286_v27 = vrot.slane %v268_v45, 7  ;;  %v353_v52 = vrot.slane %v268_v45, 1 }
  0x6e   : > { %v691_v48 = vadd.f32 %v545_v17, %v452_v39  ;;  %v302_v50 = vrot.slane %v269_v24, 7  ;;  %v692_v51 = vadd.f32 %v660_v26, %v566_v5  ;;  %v369_v53 = vrot.slane %v269_v24, 1 }
  0x6f   : > { %v453_v55 = vadd.f32 %v268_v45, %v268_v45  ;;  %v567_v59 = vadd.f32 %v269_v24, %v269_v24  ;;  %v270_v8 = vadd.f32 %v238_v47, %v210_v10  ;;  %v271_v18 = vadd.f32 %v239_v46, %v211_v41 }
  0x70   : > { %v723_v56 = vmul.f32 0.0625, %v691_v48  ;;  %v337_v57 = vsel %vm306_vm0, %v302_v50, %v286_v27  ;;  %v321_v58 = vsel %vm306_vm0, %v286_v27, %v302_v50  ;;  %v724_v60 = vmul.f32 0.0625, %v692_v51 }
  0x71   : > { %v386_v61 = vsel %vm371_vm1, %v353_v52, %v369_v53  ;;  %v514_v62 = vrot.slane %v453_v55, %v956_v6  ;;  %v402_v63 = vsel %vm371_vm1, %v369_v53, %v353_v52  ;;  %v628_v4 = vrot.slane %v567_v59, %v959_v7 }
  0x72   : > { %756 = vst.msk [vmem:[%s1012_s16 + $0xd0] sm:$0xff] %vm729_vm4, %v723_v56  ;;  %v432_v35 = vadd.f32 %v386_v61, %v337_v57  ;;  %v433_v0 = vadd.f32 %v402_v63, %v321_v58  ;;  %757 = vst.msk [vmem:[%s1012_s16 + $0xd8] sm:$0xff] %vm729_vm4, %v724_v60  ;;  %v287_v11 = vrot.slane %v270_v8, 7  ;;  %v354_v54 = vrot.slane %v270_v8, 1 }
  0x73   : > { %v303_v16 = vrot.slane %v271_v18, 7  ;;  %v370_v22 = vrot.slane %v271_v18, 1  ;;  %v454_v20 = vadd.f32 %v270_v8, %v270_v8  ;;  %v568_v25 = vadd.f32 %v271_v18, %v271_v18 }
  0x74   : > { %v547_v36 = vsel %vm437_vm2, %v514_v62, %v432_v35  ;;  %v662_v9 = vsel %vm552_vm3, %v628_v4, %v433_v0 }
  0x75   : > { %v693_v15 = vadd.f32 %v547_v36, %v453_v55  ;;  %v694_v49 = vadd.f32 %v662_v9, %v567_v59  ;;  %v338_v31 = vsel %vm306_vm0, %v303_v16, %v287_v11  ;;  %v387_v32 = vsel %vm371_vm1, %v354_v54, %v370_v22 }
  0x76   : > { %v434_v33 = vadd.f32 %v387_v32, %v338_v31  ;;  %v518_v34 = vrot.slane %v454_v20, %v956_v6  ;;  %v322_v37 = vsel %vm306_vm0, %v287_v11, %v303_v16  ;;  %v403_v12 = vsel %vm371_vm1, %v370_v22, %v354_v54 }
  0x77   : > { %v725_v29 = vmul.f32 0.0625, %v693_v15  ;;  %v726_v30 = vmul.f32 0.0625, %v694_v49  ;;  %v435_v38 = vadd.f32 %v403_v12, %v322_v37  ;;  %v632_v3 = vrot.slane %v568_v25, %v959_v7 }
  0x78   : > { %v549_v39 = vsel %vm437_vm2, %v518_v34, %v434_v33 }
  0x79   : > { %758 = vst.msk [vmem:[%s1012_s16 + $0xe0] sm:$0xff] %vm729_vm4, %v725_v29  ;;  %759 = vst.msk [vmem:[%s1012_s16 + $0xe8] sm:$0xff] %vm729_vm4, %v726_v30  ;;  %v695_v40 = vadd.f32 %v549_v39, %v454_v20  ;;  %v664_v6 = vsel %vm552_vm3, %v632_v3, %v435_v38 }
  0x7a   : > { %v696_v5 = vadd.f32 %v664_v6, %v568_v25 }
  0x7b   : > { %v727_v10 = vmul.f32 0.0625, %v695_v40 }
  0x7c   : > { %v728_v41 = vmul.f32 0.0625, %v696_v5 }
  0x7d   : > { %760 = vst.msk [vmem:[%s1012_s16 + $0xf0] sm:$0xff] %vm729_vm4, %v727_v10 }
  0x7e   : > { %761 = vst.msk [vmem:[%s1012_s16 + $0xf8] sm:$0xff] %vm729_vm4, %v728_v41 }
  0x7f PF: > { %s11_s8 = sadd.s32 1, %s904_s8   ;;  %s1425_s6 = smov %s900_s7 }
  0x80   : > { %p8_p5 = scmp.ge.s32.totalorder %s11_s8, 4   ;;  %s1426_s7 = smov %s1428_s9 }
  0x82   :  { %10 = sbr.rel (!%p8_p5) target bundleno = 2 (0x2), region = 54 }

</bundles_post_ra>
